<compile_context>
chip_gen: v7x
topology: tpu7x:2x2x1
jax: 0.10.0
libtpu: 0.0.40
codegen_flags: <defaults>
</compile_context>

<pallas_src>
import math
import numpy as np
import jax
import jax.numpy as jnp
from jax.experimental import pallas as pl
from jax.experimental.pallas import tpu as pltpu

_LANES = 128


def _cdiv(a, b):
    return -(-a // b)


def _round_up(x, m):
    return _cdiv(x, m) * m


def _pick_pack(n, d):
    """Smallest r with (n*r) % 8 == 0 and d % r == 0 (else 1: no packing)."""
    base = 8 // math.gcd(n, 8)
    return base if d % base == 0 else 1


def _make_dice_kernel(*, td, chunk, n_chunks, t_per_core, d_cols, mask_needed):
    folds = chunk // _LANES

    def lane_fold(v):
        # (nr, chunk) -> (nr, 128): VPU adds over lane-aligned static slices.
        out = v[:, :_LANES]
        for i in range(1, folds):
            out = out + v[:, i * _LANES:(i + 1) * _LANES]
        return out

    def kernel(x_ref, t_ref, inter_ref, denom_ref):
        p = pl.program_id(0)          # parallel split (v7x dual TensorCore)
        k = pl.program_id(1)          # reduction over feature tiles

        @pl.when(k == 0)
        def _init():
            inter_ref[...] = jnp.zeros_like(inter_ref)
            denom_ref[...] = jnp.zeros_like(denom_ref)

        nr = x_ref.shape[0]
        if mask_needed:
            # Un-clamped global column index of lane 0 of this tile.
            base = (p * t_per_core + k) * td
            lane_ids = jax.lax.broadcasted_iota(jnp.int32, (nr, chunk), 1)

        def accum(col0, carry):
            acc_i, acc_d = carry
            x = x_ref[:, pl.ds(col0, chunk)].astype(jnp.float32)
            t = t_ref[:, pl.ds(col0, chunk)].astype(jnp.float32)
            # sigmoid(x) == 0.5*(tanh(0.5x)+1): a single EUP op per element.
            s = 0.5 * (jnp.tanh(0.5 * x) + 1.0)
            pi = s * t                 # intersection contribution
            pd = s + t                 # denominator contribution
            if mask_needed:
                valid = (lane_ids + (base + col0)) < d_cols
                pi = jnp.where(valid, pi, 0.0)
                pd = jnp.where(valid, pd, 0.0)
            return acc_i + lane_fold(pi), acc_d + lane_fold(pd)

        zero = jnp.zeros((nr, _LANES), jnp.float32)
        if n_chunks <= 8:
            acc_i, acc_d = zero, zero
            for c in range(n_chunks):
                acc_i, acc_d = accum(c * chunk, (acc_i, acc_d))
        else:
            def body(c, carry):
                return accum(pl.multiple_of(c * chunk, _LANES), carry)
            acc_i, acc_d = jax.lax.fori_loop(0, n_chunks, body, (zero, zero),
                                             unroll=8)

        inter_ref[...] += acc_i
        denom_ref[...] += acc_d

    return kernel


def dice_loss(inp, target, *, smooth=1e-05):
    """Pallas equivalent of DiceLoss.forward(input, target) -> scalar f32."""
    assert inp.shape == target.shape
    n = inp.shape[0]
    d = int(np.prod(inp.shape[1:]))

    # Sublane packing: sample i occupies rows i*r .. i*r+r-1 (row-major, i.e.
    # exactly torch .view(N, -1) order split into r contiguous pieces).
    r = _pick_pack(n, d)
    nr = n * r
    d_cols = d // r
    itemsize = inp.dtype.itemsize + target.dtype.itemsize

    # ---- Generation-aware VMEM budget -> lane tile width ----
    try:
        vmem_cap = int(getattr(pltpu.get_tpu_info(), "vmem_capacity_bytes",
                               64 * 1024 * 1024))
    except Exception:
        vmem_cap = 64 * 1024 * 1024
    vmem_limit = min(max(vmem_cap // 2, 16 * 1024 * 1024), 64 * 1024 * 1024)
    # 2 inputs x 2 pipeline buffers inside ~half the scoped limit (headroom for
    # chunk temporaries, the tiny outputs, and compiler scratch).
    td_cap = max(_LANES,
                 ((vmem_limit // 2) // (2 * nr * itemsize)) // _LANES * _LANES)

    # ---- Column tiling: fit VMEM; >=2 tiles when big enough to feed 2 TCs ----
    want_split = d_cols >= 32 * _LANES           # ~4K columns
    desired_tiles = max(_cdiv(d_cols, td_cap), 2 if want_split else 1)
    td = min(td_cap, _round_up(_cdiv(d_cols, desired_tiles), _LANES))
    t_total = _cdiv(d_cols, td)

    p_dim = 2 if (t_total >= 2 and nr % 8 == 0) else 1
    t_per_core = _cdiv(t_total, p_dim)
    mask_needed = (p_dim * t_per_core * td != d_cols)

    if td % 512 == 0:
        chunk = 512
    elif td % 256 == 0:
        chunk = 256
    else:
        chunk = _LANES
    n_chunks = td // chunk

    # Contiguous row-major reshape: metadata only, no extra HBM pass.
    x2 = inp.reshape(nr, d_cols)
    t2 = target.reshape(nr, d_cols)

    if p_dim * t_per_core == t_total:
        in_map = lambda p, k: (0, p * t_per_core + k)
    else:  # clamp fully-out-of-range tiles (their contribution is masked to 0)
        in_map = lambda p, k: (0, jnp.minimum(p * t_per_core + k, t_total - 1))
    out_map = lambda p, k: (p, 0)

    elems = p_dim * t_per_core * td * nr
    cost = pl.CostEstimate(
        flops=6 * elems, transcendentals=elems,
        bytes_accessed=nr * d_cols * itemsize + 2 * p_dim * nr * _LANES * 4)

    inter_out, denom_out = pl.pallas_call(
        _make_dice_kernel(td=td, chunk=chunk, n_chunks=n_chunks,
                          t_per_core=t_per_core, d_cols=d_cols,
                          mask_needed=mask_needed),
        out_shape=(jax.ShapeDtypeStruct((p_dim * nr, _LANES), jnp.float32),
                   jax.ShapeDtypeStruct((p_dim * nr, _LANES), jnp.float32)),
        grid=(p_dim, t_per_core),
        in_specs=[pl.BlockSpec((nr, td), in_map),
                  pl.BlockSpec((nr, td), in_map)],
        out_specs=(pl.BlockSpec((nr, _LANES), out_map),
                   pl.BlockSpec((nr, _LANES), out_map)),
        compiler_params=pltpu.CompilerParams(
            dimension_semantics=("parallel", "arbitrary"),
            vmem_limit_bytes=vmem_limit),
        cost_estimate=cost,
    )(x2, t2)

    # Tiny epilogue in plain JAX: fold cores / packed rows / lanes, then dice.
    inter = inter_out.reshape(p_dim, n, r, _LANES).sum(axis=(0, 2, 3))
    denom = denom_out.reshape(p_dim, n, r, _LANES).sum(axis=(0, 2, 3))
    sm = jnp.float32(smooth)
    dice = 2.0 * (inter + sm) / (denom + sm)
    return (1.0 - jnp.sum(dice) / jnp.float32(n)).astype(jnp.float32)


def _dice_loss_ref(inp, target):
    """Pure-JAX reference mirroring the PyTorch module exactly."""
    N = target.shape[0]
    smooth = 1e-05
    s = jax.nn.sigmoid(inp.astype(jnp.float32))
    input_flat = s.reshape(N, -1)
    target_flat = target.astype(jnp.float32).reshape(N, -1)
    intersection = input_flat * target_flat
    loss = 2.0 * (intersection.sum(1) + smooth) / (
        input_flat.sum(1) + target_flat.sum(1) + smooth)
    return 1.0 - loss.sum() / N


if __name__ == "__main__":
    key = jax.random.PRNGKey(0)
    k1, k2 = jax.random.split(key)

    # Small NCHW shapes: batch=2, channels=4, spatial=16x16 -> D = 1024
    N, C, H, W = 2, 4, 16, 16
    logits = jax.random.normal(k1, (N, C, H, W), dtype=jnp.float32)
    target = (jax.random.uniform(k2, (N, C, H, W)) > 0.5).astype(jnp.float32)

    loss_fn = jax.jit(dice_loss)
    loss = jax.block_until_ready(loss_fn(logits, target))

    ref = _dice_loss_ref(logits, target)
    assert np.allclose(np.asarray(loss), np.asarray(ref), rtol=1e-5, atol=1e-5), (
        float(loss), float(ref))

    print("KERNEL_OK")
</pallas_src>

<mosaic_0001>
module attributes {stable_mosaic.version = 11 : i64} {
  func.func @kernel(%arg0: i32, %arg1: i32, %arg2: memref<8x256xf32, #tpu.memory_space<vmem>>, %arg3: memref<8x256xf32, #tpu.memory_space<vmem>>, %arg4: memref<8x128xf32, #tpu.memory_space<vmem>>, %arg5: memref<8x128xf32, #tpu.memory_space<vmem>>) attributes {dimension_semantics = [#tpu.dimension_semantics<parallel>, #tpu.dimension_semantics<arbitrary>], iteration_bounds = array<i64: 1, 1>, scalar_prefetch = 0 : i64, scratch_operands = 0 : i64, tpu.core_type = #tpu.core_type<tc>, window_params = [{transform_indices = @transform_0, window_bounds = array<i64: 8, 256>}, {transform_indices = @transform_1, window_bounds = array<i64: 8, 256>}, {transform_indices = @transform_2, window_bounds = array<i64: 8, 128>}, {transform_indices = @transform_3, window_bounds = array<i64: 8, 128>}]} {
    %c0_i32 = arith.constant 0 : i32
    %0 = arith.cmpi eq, %arg1, %c0_i32 : i32
    %1 = arith.extui %0 : i1 to i32
    %c0_i32_0 = arith.constant 0 : i32
    %2 = arith.cmpi ne, %1, %c0_i32_0 : i32
    scf.if %2 {
      %cst_15 = arith.constant 0.000000e+00 : f32
      %29 = vector.broadcast %cst_15 : f32 to vector<8x128xf32>
      %c0_16 = arith.constant 0 : index
      %c0_17 = arith.constant 0 : index
      %30 = vector.load %arg4[%c0_16, %c0_17] : memref<8x128xf32, #tpu.memory_space<vmem>>, vector<8x128xf32>
      tpu.vector_store %arg4[%c0_16, %c0_17], %29 {strides = array<i32>} : memref<8x128xf32, #tpu.memory_space<vmem>>, vector<8x128xf32>,
      %cst_18 = arith.constant 0.000000e+00 : f32
      %31 = vector.broadcast %cst_18 : f32 to vector<8x128xf32>
      %c0_19 = arith.constant 0 : index
      %c0_20 = arith.constant 0 : index
      %32 = vector.load %arg5[%c0_19, %c0_20] : memref<8x128xf32, #tpu.memory_space<vmem>>, vector<8x128xf32>
      tpu.vector_store %arg5[%c0_19, %c0_20], %31 {strides = array<i32>} : memref<8x128xf32, #tpu.memory_space<vmem>>, vector<8x128xf32>,
    } else {
    }
    %cst = arith.constant 0.000000e+00 : f32
    %3 = vector.broadcast %cst : f32 to vector<8x128xf32>
    %c0 = arith.constant 0 : index
    %c0_1 = arith.constant 0 : index
    %4 = vector.load %arg2[%c0, %c0_1] : memref<8x256xf32, #tpu.memory_space<vmem>>, vector<8x256xf32>
    %c0_2 = arith.constant 0 : index
    %c0_3 = arith.constant 0 : index
    %5 = vector.load %arg3[%c0_2, %c0_3] : memref<8x256xf32, #tpu.memory_space<vmem>>, vector<8x256xf32>
    %cst_4 = arith.constant 5.000000e-01 : f32
    %6 = vector.broadcast %cst_4 : f32 to vector<8x256xf32>
    %7 = arith.mulf %6, %4 : vector<8x256xf32>
    %8 = math.tanh %7 : vector<8x256xf32>
    %cst_5 = arith.constant 1.000000e+00 : f32
    %9 = vector.broadcast %cst_5 : f32 to vector<8x256xf32>
    %10 = arith.addf %8, %9 : vector<8x256xf32>
    %cst_6 = arith.constant 5.000000e-01 : f32
    %11 = vector.broadcast %cst_6 : f32 to vector<8x256xf32>
    %12 = arith.mulf %11, %10 : vector<8x256xf32>
    %13 = arith.mulf %12, %5 : vector<8x256xf32>
    %14 = arith.addf %12, %5 : vector<8x256xf32>
    %15 = vector.extract_strided_slice %13 {offsets = [0, 0], sizes = [8, 128], strides = [1, 1]} : vector<8x256xf32> to vector<8x128xf32>
    %16 = vector.extract_strided_slice %13 {offsets = [0, 128], sizes = [8, 128], strides = [1, 1]} : vector<8x256xf32> to vector<8x128xf32>
    %17 = arith.addf %15, %16 : vector<8x128xf32>
    %18 = arith.addf %3, %17 : vector<8x128xf32>
    %19 = vector.extract_strided_slice %14 {offsets = [0, 0], sizes = [8, 128], strides = [1, 1]} : vector<8x256xf32> to vector<8x128xf32>
    %20 = vector.extract_strided_slice %14 {offsets = [0, 128], sizes = [8, 128], strides = [1, 1]} : vector<8x256xf32> to vector<8x128xf32>
    %21 = arith.addf %19, %20 : vector<8x128xf32>
    %22 = arith.addf %3, %21 : vector<8x128xf32>
    %c0_7 = arith.constant 0 : index
    %c0_8 = arith.constant 0 : index
    %23 = vector.load %arg4[%c0_7, %c0_8] : memref<8x128xf32, #tpu.memory_space<vmem>>, vector<8x128xf32>
    %24 = arith.addf %23, %18 : vector<8x128xf32>
    %c0_9 = arith.constant 0 : index
    %c0_10 = arith.constant 0 : index
    %25 = vector.load %arg4[%c0_9, %c0_10] : memref<8x128xf32, #tpu.memory_space<vmem>>, vector<8x128xf32>
    tpu.vector_store %arg4[%c0_9, %c0_10], %24 {strides = array<i32>} : memref<8x128xf32, #tpu.memory_space<vmem>>, vector<8x128xf32>,
    %c0_11 = arith.constant 0 : index
    %c0_12 = arith.constant 0 : index
    %26 = vector.load %arg5[%c0_11, %c0_12] : memref<8x128xf32, #tpu.memory_space<vmem>>, vector<8x128xf32>
    %27 = arith.addf %26, %22 : vector<8x128xf32>
    %c0_13 = arith.constant 0 : index
    %c0_14 = arith.constant 0 : index
    %28 = vector.load %arg5[%c0_13, %c0_14] : memref<8x128xf32, #tpu.memory_space<vmem>>, vector<8x128xf32>
    tpu.vector_store %arg5[%c0_13, %c0_14], %27 {strides = array<i32>} : memref<8x128xf32, #tpu.memory_space<vmem>>, vector<8x128xf32>,
    return
  }
  func.func @transform_0(%arg0: i32, %arg1: i32) -> (i32, i32) {
    %c1_i32 = arith.constant 1 : i32
    %0 = arith.muli %arg0, %c1_i32 : i32
    %1 = arith.addi %0, %arg1 : i32
    %c0_i32 = arith.constant 0 : i32
    %c0_i32_0 = arith.constant 0 : i32
    return %c0_i32, %1 : i32, i32
  }
  func.func @transform_1(%arg0: i32, %arg1: i32) -> (i32, i32) {
    %c1_i32 = arith.constant 1 : i32
    %0 = arith.muli %arg0, %c1_i32 : i32
    %1 = arith.addi %0, %arg1 : i32
    %c0_i32 = arith.constant 0 : i32
    %c0_i32_0 = arith.constant 0 : i32
    return %c0_i32, %1 : i32, i32
  }
  func.func @transform_2(%arg0: i32, %arg1: i32) -> (i32, i32) {
    %c0_i32 = arith.constant 0 : i32
    %c0_i32_0 = arith.constant 0 : i32
    return %arg0, %c0_i32 : i32, i32
  }
  func.func @transform_3(%arg0: i32, %arg1: i32) -> (i32, i32) {
    %c0_i32 = arith.constant 0 : i32
    %c0_i32_0 = arith.constant 0 : i32
    return %arg0, %c0_i32 : i32, i32
  }
}

</mosaic_0001>

<bundles_post_ra>
// kernel: dice_loss.1
= control target key start
LH: loop header
LB: loop body
LE: loop exit
PB: predicated region body
PF: predicated region fallthrough
CT: control target
= control target key end

     0   :  { %s152_s0 = inlined_call_operand.vmem [shape: f32[8,256], index: 0, kind: input, shape index: {}]   ;;  %s153_s1 = inlined_call_operand.vmem [shape: f32[8,256], index: 1, kind: input, shape index: {}]   ;;  %s154_s2 = inlined_call_operand.vmem [shape: f32[8,128], index: 2, kind: output, shape index: {0}]   ;;  %s155_s3 = inlined_call_operand.vmem [shape: f32[8,128], index: 3, kind: output, shape index: {1}]  }
   0x1   :  { %v63_v0 = vld [vmem:[%s152_s0] sm:$0xff]  ;;  %v64_v1 = vld [vmem:[%s152_s0 + $0x8] sm:$0xff] }
   0x2   :  { %v67_v2 = vmul.f32 0.5, %v63_v0  ;;  %v68_v3 = vmul.f32 0.5, %v64_v1  ;;  %v65_v7 = vld [vmem:[%s153_s1] sm:$0xff]  ;;  %v66_v9 = vld [vmem:[%s153_s1 + $0x8] sm:$0xff] }
   0x4   :  { %110 = vtanh.f32 %v67_v2 }
   0x5   :  { %112 = vtanh.f32 %v68_v3 }
   0xe   :  { %v111_v4 = vpop.eup %110 }
   0xf   :  { %v113_v5 = vpop.eup %112  ;;  %v71_v6 = vadd.f32 1.0, %v111_v4 }
  0x10   :  { %v72_v8 = vadd.f32 1.0, %v113_v5 }
  0x11   :  { %v73_v10 = vmul.f32 0.5, %v71_v6 }
  0x12   :  { %v74_v11 = vmul.f32 0.5, %v72_v8 }
  0x13   :  { %v75_v12 = vmul.f32 %v73_v10, %v65_v7  ;;  %v77_v13 = vadd.f32 %v73_v10, %v65_v7 }
  0x14   :  { %v76_v14 = vmul.f32 %v74_v11, %v66_v9  ;;  %v78_v15 = vadd.f32 %v74_v11, %v66_v9 }
  0x16   :  { %v79_v16 = vadd.f32 %v76_v14, %v75_v12  ;;  %v81_v17 = vadd.f32 %v78_v15, %v77_v13 }
  0x18   :  { %85 = vst [vmem:[%s154_s2] sm:$0xff] %v79_v16  ;;  %88 = vst [vmem:[%s155_s3] sm:$0xff] %v81_v17 }

</bundles_post_ra>
